<compile_context>
chip_gen: v7x
topology: tpu7x:2x2x1
jax: 0.10.0
libtpu: 0.0.40
codegen_flags: <defaults>
</compile_context>

<pallas_src>
import jax
import jax.numpy as jnp
from jax.experimental import pallas as pl
from jax.experimental.pallas import tpu as pltpu

HID_PAD = 128  # hidden dim 80 zero-padded to one full lane width


def _round_up(x, m):
    return ((x + m - 1) // m) * m


def _cdiv(a, b):
    return -(-a // b)


# ----------------------------------------------------------------------------- kernel


def _mlp_kernel(x_ref,
                w1_ref, b1_ref,
                w2_ref, b2_ref,
                w3_ref, b3_ref,
                w4_ref, b4_ref,
                w5_ref, b5_ref,
                o_ref):
    """Feature-major MLP tile.

    x_ref  : (2, TM)    f32   batch tile, samples along lanes
    w1_ref : (128, 2)   f32   layer-1 weight (transposed, 80 -> 128 zero-padded)
    b1..b4 : (128, 1)   f32
    w2..w4 : (128, 128) bf16
    w5_ref : (8, 128)   bf16  (row 0 real, rows 1..7 zero)
    b5_ref : (1, 1)     f32
    o_ref  : (1, TM)    f32   one output lane per sample
    """
    x = x_ref[...]                                   # (2, TM)
    w1 = w1_ref[...]                                 # (128, 2)

    # Layer 1 on the VPU: K=2 is just an outer product (two broadcast FMAs),
    # not worth an almost-empty systolic-array pass through the MXU.
    h = jnp.tanh(w1[:, 0:1] * x[0:1, :] + w1[:, 1:2] * x[1:2, :] + b1_ref[...])

    def hidden_layer(w_ref, b_ref, h):
        # bf16 MXU matmul with f32 accumulation; bias-add + tanh in f32.
        z = jnp.dot(w_ref[...], h.astype(jnp.bfloat16),
                    preferred_element_type=jnp.float32)
        return jnp.tanh(z + b_ref[...])

    h = hidden_layer(w2_ref, b2_ref, h)
    h = hidden_layer(w3_ref, b3_ref, h)
    h = hidden_layer(w4_ref, b4_ref, h)

    # Layer 5: (8,128) @ (128,TM) -> (8,TM); only row 0 carries the real output.
    z = jnp.dot(w5_ref[...], h.astype(jnp.bfloat16),
                preferred_element_type=jnp.float32)
    o_ref[...] = (z[0:1, :] + b5_ref[...]).astype(o_ref.dtype)


# ----------------------------------------------------------------------------- wrapper


def prepare_params(params):
    """One-time prep: transpose to feature-major, zero-pad 80->128, cast MXU
    weights to bf16.  params: list of (W, b) with W (in, out), b (1, out)."""
    (w1, b1), (w2, b2), (w3, b3), (w4, b4), (w5, b5) = params

    def pad_t(w, rows, cols, dtype):
        wt = jnp.asarray(w).T                                   # (out, in)
        wt = jnp.pad(wt, ((0, rows - wt.shape[0]), (0, cols - wt.shape[1])))
        return wt.astype(dtype)

    def pad_b(b, rows):
        bt = jnp.asarray(b).reshape(-1, 1)                      # (out, 1)
        return jnp.pad(bt, ((0, rows - bt.shape[0]), (0, 0))).astype(jnp.float32)

    w1p = pad_t(w1, HID_PAD, w1.shape[0], jnp.float32)   # (128, 2) VPU layer -> f32
    b1p = pad_b(b1, HID_PAD)
    w2p = pad_t(w2, HID_PAD, HID_PAD, jnp.bfloat16)
    b2p = pad_b(b2, HID_PAD)
    w3p = pad_t(w3, HID_PAD, HID_PAD, jnp.bfloat16)
    b3p = pad_b(b3, HID_PAD)
    w4p = pad_t(w4, HID_PAD, HID_PAD, jnp.bfloat16)
    b4p = pad_b(b4, HID_PAD)
    w5p = pad_t(w5, 8, HID_PAD, jnp.bfloat16)            # (8, 128): Dout=1 sublane-padded
    b5p = jnp.asarray(b5).reshape(1, 1).astype(jnp.float32)
    return (w1p, b1p, w2p, b2p, w3p, b3p, w4p, b4p, w5p, b5p)


def _choose_tile(n, tm):
    """Batch tile (lanes): multiple of 128, large enough to amortize per-step
    overhead, nudged so the grid is even (v7x shards 'parallel' over 2 TCs)."""
    tm = max(128, (int(tm) // 128) * 128)
    if n <= tm:
        return _round_up(max(n, 1), 128)
    nt = _cdiv(n, tm)
    if nt % 2 == 1:
        # Shrink the tile (never pad a dead tile) to make the grid even; if the
        # 128-rounding makes it odd again, accept the (tiny) imbalance.
        tm_alt = max(128, _round_up(_cdiv(n, nt + 1), 128))
        if _cdiv(n, tm_alt) % 2 == 0:
            tm = tm_alt
    return tm


def dnn_forward(x, prepared_params, *, tm=2048):
    """x: (N, 2) float32.  prepared_params: output of prepare_params()."""
    n, din = x.shape
    tm_eff = _choose_tile(n, tm)
    n_pad = _round_up(n, tm_eff)

    # Batch-in-lanes: x -> (2, n_pad).  Padded sample lanes are zero and get
    # discarded by the final row slice.
    xt = jnp.pad(x.T, ((0, 0), (0, n_pad - n)))

    grid = (n_pad // tm_eff,)

    def wspec(shape):
        # Grid-invariant block: weights/biases stay resident in VMEM.
        return pl.BlockSpec(shape, lambda i: (0, 0))

    (w1p, b1p, w2p, b2p, w3p, b3p, w4p, b4p, w5p, b5p) = prepared_params

    out = pl.pallas_call(
        _mlp_kernel,
        out_shape=jax.ShapeDtypeStruct((1, n_pad), x.dtype),
        grid_spec=pltpu.PrefetchScalarGridSpec(
            num_scalar_prefetch=0,
            grid=grid,
            in_specs=[
                pl.BlockSpec((din, tm_eff), lambda i: (0, i)),
                wspec(w1p.shape), wspec(b1p.shape),
                wspec(w2p.shape), wspec(b2p.shape),
                wspec(w3p.shape), wspec(b3p.shape),
                wspec(w4p.shape), wspec(b4p.shape),
                wspec(w5p.shape), wspec(b5p.shape),
            ],
            out_specs=pl.BlockSpec((1, tm_eff), lambda i: (0, i)),
        ),
        compiler_params=pltpu.CompilerParams(
            dimension_semantics=("parallel",)),
    )(xt, w1p, b1p, w2p, b2p, w3p, b3p, w4p, b4p, w5p, b5p)

    # (1, n_pad) -> (N, 1): drop the batch pad, restore PyTorch's output shape.
    return out[0, :n][:, None]


# ----------------------------------------------------------------------------- reference / test


def init_params(key):
    """Deterministic init mimicking PyTorch Linear default U[-1/sqrt(fan_in), +...]."""
    dims = [(2, 80), (80, 80), (80, 80), (80, 80), (80, 1)]
    params = []
    for (din, dout) in dims:
        key, kw, kb = jax.random.split(key, 3)
        bound = 1.0 / jnp.sqrt(jnp.float32(din))
        w = jax.random.uniform(kw, (din, dout), jnp.float32, -bound, bound)
        b = jax.random.uniform(kb, (1, dout), jnp.float32, -bound, bound)
        params.append((w, b))
    return params


def dnn_reference(x, params, *, matmul_dtype=jnp.float32):
    """Plain-JAX reference.  With matmul_dtype=bfloat16 it mirrors the kernel's
    bf16-operand / f32-accumulate matmuls so the comparison stays tight."""
    h = x
    for i, (w, b) in enumerate(params):
        if i == 0:
            z = jnp.dot(h, w, preferred_element_type=jnp.float32) + b
        else:
            z = jnp.dot(h.astype(matmul_dtype), w.astype(matmul_dtype),
                        preferred_element_type=jnp.float32) + b
        h = jnp.tanh(z) if i < len(params) - 1 else z
    return h


if __name__ == "__main__":
    key = jax.random.PRNGKey(0)
    kx, kp, kx2 = jax.random.split(key, 3)

    params = init_params(kp)
    prepped = prepare_params(params)

    # Small single-tile case.
    N = 16
    x = jax.random.normal(kx, (N, 2), jnp.float32)
    out = jax.block_until_ready(dnn_forward(x, prepped))
    ref = dnn_reference(x, params, matmul_dtype=jnp.bfloat16)
    assert out.shape == (N, 1)
    assert jnp.allclose(out, ref, atol=1e-2, rtol=1e-2), "mismatch vs reference (N=16)"

    # Multi-tile case (tm forced down so the grid has several steps).
    N2 = 300
    x2 = jax.random.normal(kx2, (N2, 2), jnp.float32)
    out2 = jax.block_until_ready(dnn_forward(x2, prepped, tm=128))
    ref2 = dnn_reference(x2, params, matmul_dtype=jnp.bfloat16)
    assert out2.shape == (N2, 1)
    assert jnp.allclose(out2, ref2, atol=1e-2, rtol=1e-2), "mismatch vs reference (N=300)"

    print("KERNEL_OK")
</pallas_src>

<mosaic_0001>
module attributes {stable_mosaic.version = 11 : i64} {
  func.func @_mlp_kernel(%arg0: i32, %arg1: memref<2x128xf32, #tpu.memory_space<vmem>>, %arg2: memref<128x2xf32, #tpu.memory_space<vmem>>, %arg3: memref<128x1xf32, #tpu.memory_space<vmem>>, %arg4: memref<128x128xbf16, #tpu.memory_space<vmem>>, %arg5: memref<128x1xf32, #tpu.memory_space<vmem>>, %arg6: memref<128x128xbf16, #tpu.memory_space<vmem>>, %arg7: memref<128x1xf32, #tpu.memory_space<vmem>>, %arg8: memref<128x128xbf16, #tpu.memory_space<vmem>>, %arg9: memref<128x1xf32, #tpu.memory_space<vmem>>, %arg10: memref<8x128xbf16, #tpu.memory_space<vmem>>, %arg11: memref<1x1xf32, #tpu.memory_space<vmem>>, %arg12: memref<1x128xf32, #tpu.memory_space<vmem>>) attributes {dimension_semantics = [#tpu.dimension_semantics<parallel>], iteration_bounds = array<i64: 1>, scalar_prefetch = 0 : i64, scratch_operands = 0 : i64, tpu.core_type = #tpu.core_type<tc>, window_params = [{transform_indices = @transform_0, window_bounds = array<i64: 2, 128>}, {pipeline_mode = #tpu.pipeline_mode<synchronous>, transform_indices = @transform_1, window_bounds = array<i64: 128, 2>}, {pipeline_mode = #tpu.pipeline_mode<synchronous>, transform_indices = @transform_2, window_bounds = array<i64: 128, 1>}, {pipeline_mode = #tpu.pipeline_mode<synchronous>, transform_indices = @transform_3, window_bounds = array<i64: 128, 128>}, {pipeline_mode = #tpu.pipeline_mode<synchronous>, transform_indices = @transform_4, window_bounds = array<i64: 128, 1>}, {pipeline_mode = #tpu.pipeline_mode<synchronous>, transform_indices = @transform_5, window_bounds = array<i64: 128, 128>}, {pipeline_mode = #tpu.pipeline_mode<synchronous>, transform_indices = @transform_6, window_bounds = array<i64: 128, 1>}, {pipeline_mode = #tpu.pipeline_mode<synchronous>, transform_indices = @transform_7, window_bounds = array<i64: 128, 128>}, {pipeline_mode = #tpu.pipeline_mode<synchronous>, transform_indices = @transform_8, window_bounds = array<i64: 128, 1>}, {pipeline_mode = #tpu.pipeline_mode<synchronous>, transform_indices = @transform_9, window_bounds = array<i64: 8, 128>}, {pipeline_mode = #tpu.pipeline_mode<synchronous>, transform_indices = @transform_10, window_bounds = array<i64: 1, 1>}, {transform_indices = @transform_11, window_bounds = array<i64: 1, 128>}]} {
    %c0 = arith.constant 0 : index
    %c0_0 = arith.constant 0 : index
    %0 = vector.load %arg1[%c0, %c0_0] : memref<2x128xf32, #tpu.memory_space<vmem>>, vector<2x128xf32>
    %c0_1 = arith.constant 0 : index
    %c0_2 = arith.constant 0 : index
    %1 = vector.load %arg2[%c0_1, %c0_2] : memref<128x2xf32, #tpu.memory_space<vmem>>, vector<128x2xf32>
    %2 = vector.extract_strided_slice %1 {offsets = [0, 0], sizes = [128, 1], strides = [1, 1]} : vector<128x2xf32> to vector<128x1xf32>
    %3 = vector.extract_strided_slice %0 {offsets = [0, 0], sizes = [1, 128], strides = [1, 1]} : vector<2x128xf32> to vector<1x128xf32>
    %4 = vector.broadcast %2 : vector<128x1xf32> to vector<128x128xf32>
    %5 = vector.broadcast %3 : vector<1x128xf32> to vector<128x128xf32>
    %6 = arith.mulf %4, %5 : vector<128x128xf32>
    %7 = vector.extract_strided_slice %1 {offsets = [0, 1], sizes = [128, 1], strides = [1, 1]} : vector<128x2xf32> to vector<128x1xf32>
    %8 = vector.extract_strided_slice %0 {offsets = [1, 0], sizes = [1, 128], strides = [1, 1]} : vector<2x128xf32> to vector<1x128xf32>
    %9 = vector.broadcast %7 : vector<128x1xf32> to vector<128x128xf32>
    %10 = vector.broadcast %8 : vector<1x128xf32> to vector<128x128xf32>
    %11 = arith.mulf %9, %10 : vector<128x128xf32>
    %12 = arith.addf %6, %11 : vector<128x128xf32>
    %c0_3 = arith.constant 0 : index
    %c0_4 = arith.constant 0 : index
    %13 = vector.load %arg3[%c0_3, %c0_4] : memref<128x1xf32, #tpu.memory_space<vmem>>, vector<128x1xf32>
    %14 = vector.broadcast %13 : vector<128x1xf32> to vector<128x128xf32>
    %15 = arith.addf %12, %14 : vector<128x128xf32>
    %16 = math.tanh %15 : vector<128x128xf32>
    %c0_5 = arith.constant 0 : index
    %c0_6 = arith.constant 0 : index
    %17 = vector.load %arg4[%c0_5, %c0_6] : memref<128x128xbf16, #tpu.memory_space<vmem>>, vector<128x128xbf16>
    %18 = arith.truncf %16 : vector<128x128xf32> to vector<128x128xbf16>
    %cst = arith.constant dense<0.000000e+00> : vector<128x128xf32>
    %19 = tpu.matmul %17, %18, %cst {dimension_numbers = #tpu.dot_dimension_numbers<[1], [0], [0], [1], [0, 0, 1, 1], [], []>} : vector<128x128xbf16>, vector<128x128xbf16>, vector<128x128xf32> -> vector<128x128xf32>
    %c0_7 = arith.constant 0 : index
    %c0_8 = arith.constant 0 : index
    %20 = vector.load %arg5[%c0_7, %c0_8] : memref<128x1xf32, #tpu.memory_space<vmem>>, vector<128x1xf32>
    %21 = vector.broadcast %20 : vector<128x1xf32> to vector<128x128xf32>
    %22 = arith.addf %19, %21 : vector<128x128xf32>
    %23 = math.tanh %22 : vector<128x128xf32>
    %c0_9 = arith.constant 0 : index
    %c0_10 = arith.constant 0 : index
    %24 = vector.load %arg6[%c0_9, %c0_10] : memref<128x128xbf16, #tpu.memory_space<vmem>>, vector<128x128xbf16>
    %25 = arith.truncf %23 : vector<128x128xf32> to vector<128x128xbf16>
    %cst_11 = arith.constant dense<0.000000e+00> : vector<128x128xf32>
    %26 = tpu.matmul %24, %25, %cst_11 {dimension_numbers = #tpu.dot_dimension_numbers<[1], [0], [0], [1], [0, 0, 1, 1], [], []>} : vector<128x128xbf16>, vector<128x128xbf16>, vector<128x128xf32> -> vector<128x128xf32>
    %c0_12 = arith.constant 0 : index
    %c0_13 = arith.constant 0 : index
    %27 = vector.load %arg7[%c0_12, %c0_13] : memref<128x1xf32, #tpu.memory_space<vmem>>, vector<128x1xf32>
    %28 = vector.broadcast %27 : vector<128x1xf32> to vector<128x128xf32>
    %29 = arith.addf %26, %28 : vector<128x128xf32>
    %30 = math.tanh %29 : vector<128x128xf32>
    %c0_14 = arith.constant 0 : index
    %c0_15 = arith.constant 0 : index
    %31 = vector.load %arg8[%c0_14, %c0_15] : memref<128x128xbf16, #tpu.memory_space<vmem>>, vector<128x128xbf16>
    %32 = arith.truncf %30 : vector<128x128xf32> to vector<128x128xbf16>
    %cst_16 = arith.constant dense<0.000000e+00> : vector<128x128xf32>
    %33 = tpu.matmul %31, %32, %cst_16 {dimension_numbers = #tpu.dot_dimension_numbers<[1], [0], [0], [1], [0, 0, 1, 1], [], []>} : vector<128x128xbf16>, vector<128x128xbf16>, vector<128x128xf32> -> vector<128x128xf32>
    %c0_17 = arith.constant 0 : index
    %c0_18 = arith.constant 0 : index
    %34 = vector.load %arg9[%c0_17, %c0_18] : memref<128x1xf32, #tpu.memory_space<vmem>>, vector<128x1xf32>
    %35 = vector.broadcast %34 : vector<128x1xf32> to vector<128x128xf32>
    %36 = arith.addf %33, %35 : vector<128x128xf32>
    %37 = math.tanh %36 : vector<128x128xf32>
    %c0_19 = arith.constant 0 : index
    %c0_20 = arith.constant 0 : index
    %38 = vector.load %arg10[%c0_19, %c0_20] : memref<8x128xbf16, #tpu.memory_space<vmem>>, vector<8x128xbf16>
    %39 = arith.truncf %37 : vector<128x128xf32> to vector<128x128xbf16>
    %cst_21 = arith.constant dense<0.000000e+00> : vector<8x128xf32>
    %40 = tpu.matmul %38, %39, %cst_21 {dimension_numbers = #tpu.dot_dimension_numbers<[1], [0], [0], [1], [0, 0, 1, 1], [], []>} : vector<8x128xbf16>, vector<128x128xbf16>, vector<8x128xf32> -> vector<8x128xf32>
    %41 = vector.extract_strided_slice %40 {offsets = [0, 0], sizes = [1, 128], strides = [1, 1]} : vector<8x128xf32> to vector<1x128xf32>
    %c0_22 = arith.constant 0 : index
    %c0_23 = arith.constant 0 : index
    %42 = vector.load %arg11[%c0_22, %c0_23] : memref<1x1xf32, #tpu.memory_space<vmem>>, vector<1x1xf32>
    %43 = vector.broadcast %42 : vector<1x1xf32> to vector<1x128xf32>
    %44 = arith.addf %41, %43 : vector<1x128xf32>
    %c0_24 = arith.constant 0 : index
    %c0_25 = arith.constant 0 : index
    %45 = vector.load %arg12[%c0_24, %c0_25] : memref<1x128xf32, #tpu.memory_space<vmem>>, vector<1x128xf32>
    tpu.vector_store %arg12[%c0_24, %c0_25], %44 {strides = array<i32>} : memref<1x128xf32, #tpu.memory_space<vmem>>, vector<1x128xf32>,
    return
  }
  func.func @transform_0(%arg0: i32) -> (i32, i32) {
    %c0_i32 = arith.constant 0 : i32
    %c0_i32_0 = arith.constant 0 : i32
    return %c0_i32, %arg0 : i32, i32
  }
  func.func @transform_1(%arg0: i32) -> (i32, i32) {
    %c0_i32 = arith.constant 0 : i32
    %c0_i32_0 = arith.constant 0 : i32
    %c0_i32_1 = arith.constant 0 : i32
    return %c0_i32, %c0_i32_0 : i32, i32
  }
  func.func @transform_2(%arg0: i32) -> (i32, i32) {
    %c0_i32 = arith.constant 0 : i32
    %c0_i32_0 = arith.constant 0 : i32
    %c0_i32_1 = arith.constant 0 : i32
    return %c0_i32, %c0_i32_0 : i32, i32
  }
  func.func @transform_3(%arg0: i32) -> (i32, i32) {
    %c0_i32 = arith.constant 0 : i32
    %c0_i32_0 = arith.constant 0 : i32
    %c0_i32_1 = arith.constant 0 : i32
    return %c0_i32, %c0_i32_0 : i32, i32
  }
  func.func @transform_4(%arg0: i32) -> (i32, i32) {
    %c0_i32 = arith.constant 0 : i32
    %c0_i32_0 = arith.constant 0 : i32
    %c0_i32_1 = arith.constant 0 : i32
    return %c0_i32, %c0_i32_0 : i32, i32
  }
  func.func @transform_5(%arg0: i32) -> (i32, i32) {
    %c0_i32 = arith.constant 0 : i32
    %c0_i32_0 = arith.constant 0 : i32
    %c0_i32_1 = arith.constant 0 : i32
    return %c0_i32, %c0_i32_0 : i32, i32
  }
  func.func @transform_6(%arg0: i32) -> (i32, i32) {
    %c0_i32 = arith.constant 0 : i32
    %c0_i32_0 = arith.constant 0 : i32
    %c0_i32_1 = arith.constant 0 : i32
    return %c0_i32, %c0_i32_0 : i32, i32
  }
  func.func @transform_7(%arg0: i32) -> (i32, i32) {
    %c0_i32 = arith.constant 0 : i32
    %c0_i32_0 = arith.constant 0 : i32
    %c0_i32_1 = arith.constant 0 : i32
    return %c0_i32, %c0_i32_0 : i32, i32
  }
  func.func @transform_8(%arg0: i32) -> (i32, i32) {
    %c0_i32 = arith.constant 0 : i32
    %c0_i32_0 = arith.constant 0 : i32
    %c0_i32_1 = arith.constant 0 : i32
    return %c0_i32, %c0_i32_0 : i32, i32
  }
  func.func @transform_9(%arg0: i32) -> (i32, i32) {
    %c0_i32 = arith.constant 0 : i32
    %c0_i32_0 = arith.constant 0 : i32
    %c0_i32_1 = arith.constant 0 : i32
    return %c0_i32, %c0_i32_0 : i32, i32
  }
  func.func @transform_10(%arg0: i32) -> (i32, i32) {
    %c0_i32 = arith.constant 0 : i32
    %c0_i32_0 = arith.constant 0 : i32
    %c0_i32_1 = arith.constant 0 : i32
    return %c0_i32, %c0_i32_0 : i32, i32
  }
  func.func @transform_11(%arg0: i32) -> (i32, i32) {
    %c0_i32 = arith.constant 0 : i32
    %c0_i32_0 = arith.constant 0 : i32
    return %c0_i32, %arg0 : i32, i32
  }
}

</mosaic_0001>

<bundles_post_ra>
// kernel: tpu_custom_call.1
= control target key start
LH: loop header
LB: loop body
LE: loop exit
PB: predicated region body
PF: predicated region fallthrough
CT: control target
= control target key end

     0   :  { %s2205_s0 = inlined_call_operand.vmem [shape: f32[2,128], index: 0, kind: input, shape index: {}]   ;;  %s2206_s1 = inlined_call_operand.vmem [shape: f32[128,2], index: 1, kind: input, shape index: {}]   ;;  %s2207_s2 = inlined_call_operand.vmem [shape: f32[128,1], index: 2, kind: input, shape index: {}]   ;;  %s2208_s3 = inlined_call_operand.vmem [shape: bf16[128,128], index: 3, kind: input, shape index: {}]   ;;  %s2209_s4 = inlined_call_operand.vmem [shape: f32[128,1], index: 4, kind: input, shape index: {}]   ;;  %s2210_s5 = inlined_call_operand.vmem [shape: bf16[128,128], index: 5, kind: input, shape index: {}]   ;;  %s2211_s6 = inlined_call_operand.vmem [shape: f32[128,1], index: 6, kind: input, shape index: {}]   ;;  %s2212_s7 = inlined_call_operand.vmem [shape: bf16[128,128], index: 7, kind: input, shape index: {}]   ;;  %s2213_s8 = inlined_call_operand.vmem [shape: f32[128,1], index: 8, kind: input, shape index: {}]   ;;  %s2214_s9 = inlined_call_operand.vmem [shape: bf16[8,128], index: 9, kind: input, shape index: {}]   ;;  %s2215_s10 = inlined_call_operand.<no memory space> [shape: f32[1,1], index: 10, kind: input, shape index: {}]   ;;  %s2216_s11 = inlined_call_operand.hbm [shape: f32[1,128], index: 11, kind: output, shape index: {}]  }
   0x1   :  { %v16_v0 = vstv %s2215_s10 }
   0x2   :  { %17 = vst [vmem:[#allocation2] sm:$0x1] %v16_v0 }
   0x3   :  { %v45_v1 = vld [vmem:[%s2206_s1 + $0x10] sm:$0xff]  ;;  %v43_v2 = vld [vmem:[%s2206_s1] sm:$0xff]  ;;  %v1701_v3 = vmov 1   ;;  %v44_v5 = vld [vmem:[%s2206_s1 + $0x8] sm:$0xff]  ;;  %v1702_v8 = vmov 0  }
   0x4   :  { %1509 = vset.pattern.permute.xlu0 %v1701_v3  ;;  %1507 = vset.pattern.permute.xlu1 %v1701_v3  ;;  %v47_v4 = vld [vmem:[%s2206_s1 + $0x20] sm:$0xff]  ;;  %v49_v6 = vld [vmem:[%s2206_s1 + $0x30] sm:$0xff]  ;;  %v46_v7 = vld [vmem:[%s2206_s1 + $0x18] sm:$0xff] }
   0x5   :  { %168 = vperm.xlu0 %1509, %v45_v1   ;;  %160 = vperm.xlu1 %1507, %v43_v2   ;;  %v51_v9 = vld [vmem:[%s2206_s1 + $0x40] sm:$0xff]  ;;  %v53_v10 = vld [vmem:[%s2206_s1 + $0x50] sm:$0xff]  ;;  %v48_v14 = vld [vmem:[%s2206_s1 + $0x28] sm:$0xff] }
   0x6   :  { %v259_v11 = vld [vmem:[%s2207_s2] sm:$0xff]  ;;  %v1810_v13 = vld [vmem:[%s2206_s1 + $0x70] sm:$0xff] }
   0x7   :  { %v1803_v12 = vld [vmem:[%s2206_s1 + $0x60] sm:$0xff]  ;;  %v261_v15 = vld [vmem:[%s2207_s2 + $0x10] sm:$0xff] }
   0x9   :  { %176 = vperm.xlu0 %1509, %v47_v4   ;;  %164 = vperm.xlu1 %1507, %v44_v5  }
   0xd   :  { %184 = vperm.xlu0 %1509, %v49_v6   ;;  %1508 = vset.pattern.permute.xlu1 %v1702_v8 }
   0xe   :  { %76 = vperm.xlu1 %1508, %v46_v7  }
  0x11   :  { %192 = vperm.xlu0 %1509, %v51_v9  }
  0x12   :  { %1510 = vset.pattern.permute.xlu1 %v1701_v3 }
  0x13   :  { %172 = vperm.xlu1 %1510, %v46_v7  }
  0x15   :  { %200 = vperm.xlu0 %1509, %v53_v10  }
  0x17   :  { %1511 = vset.pattern.permute.xlu1 %v1702_v8 }
  0x18   :  { %277 = vperm.xlu1 %1511, %v259_v11  }
  0x19   :  { %208 = vperm.xlu0 %1509, %v1803_v12  }
  0x1c   :  { %81 = vperm.xlu1 %1511, %v47_v4  }
  0x1d   :  { %216 = vperm.xlu0 %1509, %v1810_v13  }
  0x20   :  { %86 = vperm.xlu1 %1511, %v48_v14  }
  0x21   :  { %1522 = vset.pattern.permute.xlu0 %v1702_v8 }
  0x22   :  { %61 = vperm.xlu0 %1522, %v43_v2  }
  0x24   :  { %1512 = vset.pattern.permute.xlu1 %v1701_v3 }
  0x25   :  { %180 = vperm.xlu1 %1512, %v48_v14  }
  0x26   :  { %66 = vperm.xlu0 %1522, %v44_v5  }
  0x27   :  { %18 = vsyncpa [#allocation4], 0  ;;  %v260_v16 = vld [vmem:[%s2207_s2 + $0x8] sm:$0xff]  ;;  %v262_v17 = vld [vmem:[%s2207_s2 + $0x18] sm:$0xff]  ;;  %vm1704_vm0 = vmmov 0   ;;  %s1705_s10 = smov [#allocation3]  }
  0x28   :  { %v50_v18 = vld [vmem:[%s2206_s1 + $0x38] sm:$0xff]  ;;  %v264_v19 = vld [vmem:[%s2207_s2 + $0x28] sm:$0xff]  ;;  %v263_v21 = vld [vmem:[%s2207_s2 + $0x20] sm:$0xff]  ;;  %s1297_s25 = sshll.u32 %s1705_s10, 4  ;;  %s1298_s25 = int_to_ptr.vmem [resolvable:$true] %s1297_s25 }
  0x29   :  { %1513 = vset.pattern.permute.xlu1 %v1702_v8  ;;  %v266_v20 = vld [vmem:[%s2207_s2 + $0x38] sm:$0xff]  ;;  %v268_v22 = vld [vmem:[%s2207_s2 + $0x48] sm:$0xff]  ;;  %v411_v26 = vld [vmem:[%s2209_s4] sm:$0xff]  ;;  %s1677_s26 = scalar_lea.vmem %s1298_s25, 16  ;;  %p1682_p1 = scmp.lt.s32.totalorder %s1298_s25, %s1298_s25 }
  0x2a   :  { %71 = vperm.xlu0 %1522, %v45_v1   ;;  %287 = vperm.xlu1 %1513, %v261_v15   ;;  %v270_v23 = vld [vmem:[%s2207_s2 + $0x58] sm:$0xff]  ;;  %v52_v24 = vld [vmem:[%s2206_s1 + $0x48] sm:$0xff]  ;;  %v413_v27 = vld [vmem:[%s2209_s4 + $0x10] sm:$0xff]  ;;  %p1678_p0 = scmp.ne.s32.totalorder %s1298_s25, %s1677_s26 }
  0x2b   :  { %v272_v25 = vld [vmem:[%s2207_s2 + $0x68] sm:$0xff]  ;;  %v265_v28 = vld [vmem:[%s2207_s2 + $0x30] sm:$0xff]  ;;  %v415_v29 = vld [vmem:[%s2209_s4 + $0x20] sm:$0xff] }
  0x2c   :  { %v417_v30 = vld [vmem:[%s2209_s4 + $0x30] sm:$0xff]  ;;  %v54_v31 = vld [vmem:[%s2206_s1 + $0x58] sm:$0xff]  ;;  %v419_v32 = vld [vmem:[%s2209_s4 + $0x40] sm:$0xff] }
  0x2d   :  { %v421_v33 = vld [vmem:[%s2209_s4 + $0x50] sm:$0xff]  ;;  %v267_v34 = vld [vmem:[%s2207_s2 + $0x40] sm:$0xff]  ;;  %v56_v37 = vld [vmem:[%s2206_s1 + $0x68] sm:$0xff] }
  0x2e   :  { %282 = vperm.xlu0 %1522, %v260_v16   ;;  %91 = vperm.xlu1 %1513, %v49_v6   ;;  %v423_v35 = vld [vmem:[%s2209_s4 + $0x60] sm:$0xff]  ;;  %v425_v36 = vld [vmem:[%s2209_s4 + $0x70] sm:$0xff]  ;;  %v58_v44 = vld [vmem:[%s2206_s1 + $0x78] sm:$0xff] }
  0x2f   :  { %v692_v38 = vld [vmem:[%s2211_s6] sm:$0xff]  ;;  %v694_v39 = vld [vmem:[%s2211_s6 + $0x10] sm:$0xff]  ;;  %v274_v55 = vld [vmem:[%s2207_s2 + $0x78] sm:$0xff] }
  0x30   :  { %v696_v40 = vld [vmem:[%s2211_s6 + $0x20] sm:$0xff]  ;;  %v269_v41 = vld [vmem:[%s2207_s2 + $0x50] sm:$0xff]  ;;  %v412_v59 = vld [vmem:[%s2209_s4 + $0x8] sm:$0xff] }
  0x31   :  { %v698_v42 = vld [vmem:[%s2211_s6 + $0x30] sm:$0xff]  ;;  %v700_v43 = vld [vmem:[%s2211_s6 + $0x40] sm:$0xff]  ;;  %v414_v62 = vld [vmem:[%s2209_s4 + $0x18] sm:$0xff] }
  0x32   :  { %292 = vperm.xlu0 %1522, %v262_v17   ;;  %96 = vperm.xlu1 %1513, %v50_v18   ;;  %v702_v45 = vld [vmem:[%s2211_s6 + $0x50] sm:$0xff]  ;;  %v704_v46 = vld [vmem:[%s2211_s6 + $0x60] sm:$0xff]  ;;  %v416_v2 = vld [vmem:[%s2209_s4 + $0x28] sm:$0xff] }
  0x33   :  { %v271_v47 = vld [vmem:[%s2207_s2 + $0x60] sm:$0xff]  ;;  %v706_v48 = vld [vmem:[%s2211_s6 + $0x70] sm:$0xff]  ;;  %v418_v7 = vld [vmem:[%s2209_s4 + $0x38] sm:$0xff] }
  0x34   :  { %v273_v51 = vld [vmem:[%s2207_s2 + $0x70] sm:$0xff]  ;;  %v973_v52 = vld [vmem:[%s2213_s8] sm:$0xff] }
  0x35   :  { %v975_v56 = vld [vmem:[%s2213_s8 + $0x10] sm:$0xff]  ;;  %v977_v60 = vld [vmem:[%s2213_s8 + $0x20] sm:$0xff] }
  0x36   :  { %302 = vperm.xlu0 %1522, %v264_v19   ;;  %1514 = vset.pattern.permute.xlu1 %v1701_v3  ;;  %v979_v0 = vld [vmem:[%s2213_s8 + $0x30] sm:$0xff]  ;;  %v981_v5 = vld [vmem:[%s2213_s8 + $0x40] sm:$0xff] }
  0x37   :  { %188 = vperm.xlu1 %1514, %v50_v18   ;;  %v42_v16 = vld [vmem:[%s2205_s0] sm:$0x3] }
  0x38   :  { %v985_v18 = vld [vmem:[%s2213_s8 + $0x60] sm:$0xff] }
  0x3a   :  { %312 = vperm.xlu0 %1522, %v266_v20   ;;  %v422_v20 = vld [vmem:[%s2209_s4 + $0x58] sm:$0xff] }
  0x3b   :  { %1515 = vset.pattern.permute.xlu1 %v1702_v8 }
  0x3c   :  { %297 = vperm.xlu1 %1515, %v263_v21  }
  0x3e   :  { %322 = vperm.xlu0 %1522, %v268_v22  }
  0x40   :  { %101 = vperm.xlu1 %1515, %v51_v9  }
  0x42   :  { %332 = vperm.xlu0 %1522, %v270_v23   ;;  %v987_v23 = vld [vmem:[%s2213_s8 + $0x70] sm:$0xff] }
  0x44   :  { %106 = vperm.xlu1 %1515, %v52_v24  }
  0x46   :  { %342 = vperm.xlu0 %1522, %v272_v25  }
  0x48   :  { %1516 = vset.pattern.permute.xlu1 %v1701_v3 }
  0x49   :  { %196 = vperm.xlu1 %1516, %v52_v24  }
  0x4a   :  { %429 = vperm.xlu0 %1522, %v411_v26  }
  0x4d   :  { %1517 = vset.pattern.permute.xlu1 %v1702_v8 }
  0x4e   :  { %439 = vperm.xlu0 %1522, %v413_v27   ;;  %307 = vperm.xlu1 %1517, %v265_v28   ;;  %v424_v27 = vld [vmem:[%s2209_s4 + $0x68] sm:$0xff] }
  0x52   :  { %449 = vperm.xlu0 %1522, %v415_v29   ;;  %111 = vperm.xlu1 %1517, %v53_v10   ;;  %v983_v10 = vld [vmem:[%s2213_s8 + $0x50] sm:$0xff]  ;;  %v1279_v29 = vld [vmem:[#allocation2] sm:$0x1] }
  0x56   :  { %459 = vperm.xlu0 %1522, %v417_v30   ;;  %116 = vperm.xlu1 %1517, %v54_v31  }
  0x5a   :  { %469 = vperm.xlu0 %1522, %v419_v32   ;;  %1518 = vset.pattern.permute.xlu1 %v1701_v3 }
  0x5b   :  { %204 = vperm.xlu1 %1518, %v54_v31  }
  0x5e   :  { %479 = vperm.xlu0 %1522, %v421_v33  }
  0x5f   :  { %1519 = vset.pattern.permute.xlu1 %v1702_v8 }
  0x60   :  { %317 = vperm.xlu1 %1519, %v267_v34  }
  0x62   :  { %489 = vperm.xlu0 %1522, %v423_v35   ;;  %v426_v35 = vld [vmem:[%s2209_s4 + $0x78] sm:$0xff] }
  0x64   :  { %121 = vperm.xlu1 %1519, %v1803_v12   ;;  %v420_v12 = vld [vmem:[%s2209_s4 + $0x48] sm:$0xff]  ;;  %s1681_s4 = scalar_lea.vmem %s1298_s25, 32 }
  0x65   :  { %p1683_p2 = scmp.lt.s32.totalorder %s1681_s4, %s1677_s26 }
  0x66   :  { %499 = vperm.xlu0 %1522, %v425_v36  }
  0x67   :  { %p1684_p3 = por %p1683_p2, %p1682_p1 }
  0x68   :  { %126 = vperm.xlu1 %1519, %v56_v37  }
  0x69   :  { %p1685_p4 = pnand %p1684_p3, %p1678_p0 }
  0x6a   :  { %710 = vperm.xlu0 %1522, %v692_v38  }
  0x6c   :  { %1520 = vset.pattern.permute.xlu1 %v1701_v3 }
  0x6d   :  { %212 = vperm.xlu1 %1520, %v56_v37  }
  0x6e   :  { %720 = vperm.xlu0 %1522, %v694_v39  }
  0x71   :  { %1521 = vset.pattern.permute.xlu1 %v1702_v8 }
  0x72   :  { %730 = vperm.xlu0 %1522, %v696_v40   ;;  %327 = vperm.xlu1 %1521, %v269_v41  }
  0x76   :  { %740 = vperm.xlu0 %1522, %v698_v42   ;;  %131 = vperm.xlu1 %1521, %v1810_v13   ;;  %v1525_v13 = vld [vmem:[%s2208_s3] sm:$0xff]  }
  0x77   :  { %1402 = vmatprep.mubr.bf16.mxu0 %v1525_v13 }
  0x7a   :  { %750 = vperm.xlu0 %1522, %v700_v43   ;;  %136 = vperm.xlu1 %1521, %v58_v44  }
  0x7e   :  { %760 = vperm.xlu0 %1522, %v702_v45   ;;  %1523 = vset.pattern.permute.xlu1 %v1701_v3  ;;  %v139_v3 = vlaneseq }
  0x7f   :  { %220 = vperm.xlu1 %1523, %v58_v44   ;;  %v693_v44 = vld [vmem:[%s2211_s6 + $0x8] sm:$0xff] }
  0x82   :  { %770 = vperm.xlu0 %1522, %v704_v46  }
  0x83   :  { %1524 = vset.pattern.permute.xlu1 %v1702_v8  ;;  %v1980_v8 = vshrl.u32 %v139_v3, 7 }
  0x84   :  { %337 = vperm.xlu1 %1524, %v271_v47   ;;  %v161_v49 = vpop.permute.xlu1 %160  ;;  %v169_v50 = vpop.permute.xlu0 %168 }
  0x85   :  { %v225_v14 = vsub.s32 1, %v1980_v8  ;;  %v141_v15 = vsub.s32 0, %v1980_v8 }
  0x86   :  { %780 = vperm.xlu0 %1522, %v706_v48  }
  0x87   :  { %v2006_v21 = vrot.slane %v42_v16, %v225_v14  ;;  %v2010_v22 = vrot.slane %v42_v16, %v141_v15 }
  0x88   :  { %347 = vperm.xlu1 %1524, %v273_v51   ;;  %v1939_v53 = vpop.permute.xlu1 %164  ;;  %v1941_v54 = vpop.permute.xlu0 %176  ;;  %v695_v51 = vld [vmem:[%s2211_s6 + $0x18] sm:$0xff] }
  0x89   :  { %v227_v28 = vmul.f32 %v2006_v21, %v161_v49  ;;  %v229_v30 = vmul.f32 %v2006_v21, %v169_v50  ;;  %v228_v36 = vmul.f32 %v2006_v21, %v1939_v53 }
  0x8a   :  { %991 = vperm.xlu0 %1522, %v973_v52  }
  0x8c   :  { %352 = vperm.xlu1 %1524, %v274_v55   ;;  %v1949_v57 = vpop.permute.xlu0 %184 }
  0x8d   :  { %v1951_v58 = vpop.permute.xlu1 %76 }
  0x8e   :  { %1001 = vperm.xlu0 %1522, %v975_v56   ;;  %v146_v45 = vmul.f32 %v2010_v22, %v1951_v58  ;;  %v697_v56 = vld [vmem:[%s2211_s6 + $0x28] sm:$0xff]  ;;  %v231_v58 = vmul.f32 %v2006_v21, %v1941_v54 }
  0x90   :  { %434 = vperm.xlu1 %1524, %v412_v59   ;;  %v1959_v61 = vpop.permute.xlu0 %192 }
  0x92   :  { %1011 = vperm.xlu0 %1522, %v977_v60   ;;  %v173_v63 = vpop.permute.xlu1 %172 }
  0x93   :  { %v230_v38 = vmul.f32 %v2006_v21, %v173_v63 }
  0x94   :  { %444 = vperm.xlu1 %1524, %v414_v62   ;;  %v1967_v1 = vpop.permute.xlu0 %200 }
  0x95   :  { %v246_v48 = vadd.f32 %v230_v38, %v146_v45  ;;  %v976_v38 = vld [vmem:[%s2213_s8 + $0x18] sm:$0xff] }
  0x96   :  { %1021 = vperm.xlu0 %1522, %v979_v0   ;;  %v980_v45 = vld [vmem:[%s2213_s8 + $0x38] sm:$0xff] }
  0x97   :  { %v278_v4 = vpop.permute.xlu1 %277 }
  0x98   :  { %454 = vperm.xlu1 %1524, %v416_v2   ;;  %v1975_v6 = vpop.permute.xlu0 %208  ;;  %v699_v2 = vld [vmem:[%s2211_s6 + $0x38] sm:$0xff] }
  0x9a   :  { %1031 = vperm.xlu0 %1522, %v981_v5  }
  0x9b   :  { %v1982_v9 = vpop.permute.xlu1 %81 }
  0x9c   :  { %464 = vperm.xlu1 %1524, %v418_v7   ;;  %v1987_v11 = vpop.permute.xlu0 %216  ;;  %v147_v59 = vmul.f32 %v2010_v22, %v1982_v9  ;;  %v701_v9 = vld [vmem:[%s2211_s6 + $0x48] sm:$0xff] }
  0x9e   :  { %1041 = vperm.xlu0 %1522, %v983_v10  }
  0x9f   :  { %v87_v17 = vpop.permute.xlu1 %86 }
  0xa0   :  { %474 = vperm.xlu1 %1524, %v420_v12   ;;  %v148_v55 = vmul.f32 %v2010_v22, %v87_v17  ;;  %v703_v17 = vld [vmem:[%s2211_s6 + $0x58] sm:$0xff] }
  0xa1   :  { %v62_v19 = vpop.permute.xlu0 %61 }
  0xa2   :  { %1051 = vperm.xlu0 %1522, %v985_v18   ;;  %v143_v24 = vmul.f32 %v2010_v22, %v62_v19 }
  0xa4   :  { %484 = vperm.xlu1 %1524, %v422_v20   ;;  %v181_v25 = vpop.permute.xlu1 %180  ;;  %v243_v31 = vadd.f32 %v227_v28, %v143_v24 }
  0xa5   :  { %v67_v26 = vpop.permute.xlu0 %66  ;;  %v232_v53 = vmul.f32 %v2006_v21, %v181_v25 }
  0xa6   :  { %1061 = vperm.xlu0 %1522, %v987_v23   ;;  %v144_v32 = vmul.f32 %v2010_v22, %v67_v26  ;;  %v355_v39 = vadd.f32 %v278_v4, %v243_v31  ;;  %v247_v4 = vadd.f32 %v231_v58, %v147_v59  ;;  %v705_v23 = vld [vmem:[%s2211_s6 + $0x68] sm:$0xff] }
  0xa7   :  { %v248_v63 = vadd.f32 %v232_v53, %v148_v55  ;;  %v982_v53 = vld [vmem:[%s2213_s8 + $0x48] sm:$0xff] }
  0xa8   :  { %494 = vperm.xlu1 %1524, %v424_v27   ;;  %v244_v41 = vadd.f32 %v228_v36, %v144_v32  ;;  %1549 = vtanh.f32 %v355_v39  ;;  %v233_v27 = vmul.f32 %v2006_v21, %v1949_v57  ;;  %v707_v32 = vld [vmem:[%s2211_s6 + $0x78] sm:$0xff]  ;;  %v974_v57 = vld [vmem:[%s2213_s8 + $0x8] sm:$0xff] }
  0xa9   :  { %v72_v33 = vpop.permute.xlu0 %71  ;;  %v288_v34 = vpop.permute.xlu1 %287 }
  0xaa   :  { %v145_v37 = vmul.f32 %v2010_v22, %v72_v33  ;;  %1282 = vperm.xlu0 %1522, %v1279_v29  }
  0xac   :  { %v245_v40 = vadd.f32 %v229_v30, %v145_v37  ;;  %504 = vperm.xlu1 %1524, %v426_v35  }
  0xad   :  { %v283_v42 = vpop.permute.xlu0 %282  ;;  %v92_v43 = vpop.permute.xlu1 %91 }
  0xae   :  { %v356_v46 = vadd.f32 %v283_v42, %v244_v41  ;;  %v357_v47 = vadd.f32 %v288_v34, %v245_v40  ;;  %v149_v28 = vmul.f32 %v2010_v22, %v92_v43  ;;  %v978_v41 = vld [vmem:[%s2213_s8 + $0x28] sm:$0xff] }
  0xb0   :  { %715 = vperm.xlu1 %1524, %v693_v44   ;;  %1551 = vtanh.f32 %v356_v46  ;;  %v249_v34 = vadd.f32 %v233_v27, %v149_v28 }
  0xb1   :  { %v293_v49 = vpop.permute.xlu0 %292  ;;  %v97_v50 = vpop.permute.xlu1 %96  ;;  %1553 = vtanh.f32 %v357_v47  ;;  %v235_v47 = vmul.f32 %v2006_v21, %v1959_v61  ;;  %v984_v61 = vld [vmem:[%s2213_s8 + $0x58] sm:$0xff] }
  0xb2   :  { %v358_v52 = vadd.f32 %v293_v49, %v246_v48  ;;  %v1550_v3 = vpop.eup %1549  ;;  %v150_v20 = vmul.f32 %v2010_v22, %v97_v50 }
  0xb4   :  { %1555 = vtanh.f32 %v358_v52  ;;  %725 = vperm.xlu1 %1524, %v695_v51  }
  0xb5   :  { %v303_v60 = vpop.permute.xlu0 %302 }
  0xb6   :  { %v189_v62 = vpop.permute.xlu1 %188  ;;  %v360_v0 = vadd.f32 %v303_v60, %v248_v63  ;;  %v986_v60 = vld [vmem:[%s2213_s8 + $0x68] sm:$0xff] }
  0xb7   :  { %v234_v18 = vmul.f32 %v2006_v21, %v189_v62 }
  0xb8   :  { %735 = vperm.xlu1 %1524, %v697_v56   ;;  %1557 = vtanh.f32 %v360_v0 }
  0xb9   :  { %v250_v25 = vadd.f32 %v234_v18, %v150_v20  ;;  %v313_v29 = vpop.permute.xlu0 %312 }
  0xba   :  { %v1552_v5 = vpop.eup %1551 }
  0xbb   :  { %v298_v7 = vpop.permute.xlu1 %297  ;;  %v403_v12 = vpack.c.bf16 %v1552_v5, %v1550_v3  ;;  %v1554_v54 = vpop.eup %1553  ;;  %v362_v33 = vadd.f32 %v313_v29, %v250_v25  ;;  %v239_v29 = vmul.f32 %v2006_v21, %v1975_v6 }
  0xbc   :  { %v359_v10 = vadd.f32 %v298_v7, %v247_v4  ;;  %745 = vperm.xlu1 %1524, %v699_v2   ;;  %v988_v2 = vld [vmem:[%s2213_s8 + $0x78] sm:$0xff] }
  0xbd   :  { %1386 = vmatprep.subr.bf16.mxu0 %v403_v12  ;;  %v323_v51 = vpop.permute.xlu0 %322 }
  0xbe   :  { %v1556_v13 = vpop.eup %1555  ;;  %1559 = vtanh.f32 %v359_v10  ;;  %1387 = vmatpush3.bf16.msra.mxu0 %v403_v12 }
  0xbf   :  { %v102_v14 = vpop.permute.xlu1 %101  ;;  %v404_v16 = vpack.c.bf16 %v1556_v13, %v1554_v54  ;;  %1561 = vtanh.f32 %v362_v33  ;;  %v237_v54 = vmul.f32 %v2006_v21, %v1967_v1 }
  0xc0   :  { %755 = vperm.xlu1 %1524, %v701_v9   ;;  %v151_v48 = vmul.f32 %v2010_v22, %v102_v14 }
  0xc1   :  { %1388 = vmatprep.subr.bf16.mxu0 %v404_v16  ;;  %v333_v9 = vpop.permute.xlu0 %332 }
  0xc2   :  { %1389 = vmatpush3.bf16.msra.mxu0 %v404_v16  ;;  %v1558_v24 = vpop.eup %1557  ;;  %v251_v55 = vadd.f32 %v235_v47, %v151_v48  ;;  %v1528_v48 = vld [vmem:[%s2208_s3 + $0x18] sm:$0xff]  }
  0xc3   :  { %v107_v19 = vpop.permute.xlu1 %106 }
  0xc4   :  { %765 = vperm.xlu1 %1524, %v703_v17   ;;  %v152_v42 = vmul.f32 %v2010_v22, %v107_v19 }
  0xc8   :  { %v1560_v26 = vpop.eup %1559  ;;  %775 = vperm.xlu1 %1524, %v705_v23   ;;  %v197_v30 = vpop.permute.xlu1 %196 }
  0xc9   :  { %v405_v31 = vpack.c.bf16 %v1558_v24, %v1560_v26  ;;  %v236_v39 = vmul.f32 %v2006_v21, %v197_v30  ;;  %v1562_v43 = vpop.eup %1561  ;;  %v343_v30 = vpop.permute.xlu0 %342 }
  0xcb   :  { %1390 = vmatprep.subr.bf16.mxu0 %v405_v31  ;;  %v252_v44 = vadd.f32 %v236_v39, %v152_v42 }
  0xcc   :  { %785 = vperm.xlu1 %1524, %v707_v32   ;;  %1391 = vmatpush3.bf16.msra.mxu0 %v405_v31 }
  0xcd   :  { %v308_v35 = vpop.permute.xlu1 %307  ;;  %v364_v52 = vadd.f32 %v323_v51, %v252_v44  ;;  %v1531_v51 = vld [vmem:[%s2208_s3 + $0x30] sm:$0xff]  }
  0xce   :  { %v361_v36 = vadd.f32 %v308_v35, %v249_v34 }
  0xd0   :  { %1563 = vtanh.f32 %v361_v36  ;;  %996 = vperm.xlu1 %1524, %v974_v57   ;;  %v241_v57 = vmul.f32 %v2006_v21, %v1987_v11 }
  0xd1   :  { %v112_v37 = vpop.permute.xlu1 %111  ;;  %1565 = vtanh.f32 %v364_v52  ;;  %v1532_v52 = vld [vmem:[%s2208_s3 + $0x38] sm:$0xff]  }
  0xd2   :  { %v153_v7 = vmul.f32 %v2010_v22, %v112_v37 }
  0xd4   :  { %1006 = vperm.xlu1 %1524, %v976_v38   ;;  %v253_v14 = vadd.f32 %v237_v54, %v153_v7 }
  0xd5   :  { %v117_v40 = vpop.permute.xlu1 %116 }
  0xd6   :  { %v154_v0 = vmul.f32 %v2010_v22, %v117_v40 }
  0xd8   :  { %1016 = vperm.xlu1 %1524, %v978_v41  }
  0xda   :  { %v1564_v46 = vpop.eup %1563  ;;  %v205_v49 = vpop.permute.xlu1 %204 }
  0xdb   :  { %v406_v50 = vpack.c.bf16 %v1562_v43, %v1564_v46  ;;  %v238_v62 = vmul.f32 %v2006_v21, %v205_v49  ;;  %v1566_v3 = vpop.eup %1565  ;;  %v1529_v49 = vld [vmem:[%s2208_s3 + $0x20] sm:$0xff]  }
  0xdc   :  { %1026 = vperm.xlu1 %1524, %v980_v45  }
  0xdd   :  { %1392 = vmatprep.subr.bf16.mxu0 %v406_v50  ;;  %v254_v4 = vadd.f32 %v238_v62, %v154_v0 }
  0xde   :  { %1393 = vmatpush3.bf16.msra.mxu0 %v406_v50  ;;  %v1530_v50 = vld [vmem:[%s2208_s3 + $0x28] sm:$0xff]  }
  0xdf   :  { %v318_v56 = vpop.permute.xlu1 %317  ;;  %v366_v13 = vadd.f32 %v333_v9, %v254_v4 }
  0xe0   :  { %v363_v58 = vadd.f32 %v318_v56, %v251_v55  ;;  %1036 = vperm.xlu1 %1524, %v982_v53   ;;  %v1533_v53 = vld [vmem:[%s2210_s5] sm:$0xff]   ;;  %v430_v55 = vpop.permute.xlu0 %429 }
  0xe1   :  { %1434 = vmatprep.mubr.bf16.mxu1 %v1533_v53 }
  0xe2   :  { %1567 = vtanh.f32 %v363_v58 }
  0xe3   :  { %v122_v59 = vpop.permute.xlu1 %121  ;;  %1569 = vtanh.f32 %v366_v13 }
  0xe4   :  { %1046 = vperm.xlu1 %1524, %v984_v61   ;;  %v155_v1 = vmul.f32 %v2010_v22, %v122_v59  ;;  %v440_v58 = vpop.permute.xlu0 %439 }
  0xe6   :  { %v255_v32 = vadd.f32 %v239_v29, %v155_v1 }
  0xe7   :  { %v127_v63 = vpop.permute.xlu1 %126 }
  0xe8   :  { %1056 = vperm.xlu1 %1524, %v986_v60   ;;  %v156_v23 = vmul.f32 %v2010_v22, %v127_v63  ;;  %v450_v59 = vpop.permute.xlu0 %449 }
  0xec   :  { %v1568_v5 = vpop.eup %1567  ;;  %1066 = vperm.xlu1 %1524, %v988_v2   ;;  %v213_v10 = vpop.permute.xlu1 %212 }
  0xed   :  { %v407_v12 = vpack.c.bf16 %v1566_v3, %v1568_v5  ;;  %v240_v19 = vmul.f32 %v2006_v21, %v213_v10  ;;  %v1570_v24 = vpop.eup %1569  ;;  %v460_v62 = vpop.permute.xlu0 %459 }
  0xef   :  { %1394 = vmatprep.subr.bf16.mxu0 %v407_v12  ;;  %v256_v25 = vadd.f32 %v240_v19, %v156_v23 }
  0xf0   :  { %1395 = vmatpush3.bf16.msra.mxu0 %v407_v12 }
  0xf1   :  { %v328_v16 = vpop.permute.xlu1 %327  ;;  %v368_v31 = vadd.f32 %v343_v30, %v256_v25  ;;  %v470_v54 = vpop.permute.xlu0 %469 }
  0xf2   :  { %v365_v17 = vadd.f32 %v328_v16, %v253_v14 }
  0xf4   :  { %1571 = vtanh.f32 %v365_v17 }
  0xf5   :  { %v132_v18 = vpop.permute.xlu1 %131  ;;  %1573 = vtanh.f32 %v368_v31  ;;  %v480_v23 = vpop.permute.xlu0 %479 }
  0xf6   :  { %v157_v33 = vmul.f32 %v2010_v22, %v132_v18 }
  0xf8   :  { %v257_v38 = vadd.f32 %v241_v57, %v157_v33 }
  0xf9   :  { %v137_v20 = vpop.permute.xlu1 %136 }
  0xfa   :  { %v158_v6 = vmul.f32 %v2010_v22, %v137_v20  ;;  %v1527_v22 = vld [vmem:[%s2208_s3 + $0x10] sm:$0xff]  }
  0xfe   :  { %v1572_v26 = vpop.eup %1571  ;;  %v221_v27 = vpop.permute.xlu1 %220 }
  0xff   :  { %v408_v28 = vpack.c.bf16 %v1570_v24, %v1572_v26  ;;  %v242_v36 = vmul.f32 %v2006_v21, %v221_v27  ;;  %v1574_v43 = vpop.eup %1573  ;;  %v1526_v21 = vld [vmem:[%s2208_s3 + $0x8] sm:$0xff]  }
 0x101   :  { %1396 = vmatprep.subr.bf16.mxu0 %v408_v28  ;;  %v258_v40 = vadd.f32 %v242_v36, %v158_v6 }
 0x102   :  { %1397 = vmatpush3.bf16.msra.mxu0 %v408_v28 }
 0x103   :  { %v338_v34 = vpop.permute.xlu1 %337 }
 0x104   :  { %v367_v35 = vadd.f32 %v338_v34, %v255_v32  ;;  %v490_v34 = vpop.permute.xlu0 %489 }
 0x106   :  { %1575 = vtanh.f32 %v367_v35 }
 0x107   :  { %v348_v37 = vpop.permute.xlu1 %347 }
 0x108   :  { %v369_v39 = vadd.f32 %v348_v37, %v257_v38 }
 0x10a   :  { %1577 = vtanh.f32 %v369_v39 }
 0x10b   :  { %v353_v41 = vpop.permute.xlu1 %352 }
 0x10c   :  { %v370_v42 = vadd.f32 %v353_v41, %v258_v40 }
 0x10e   :  { %1579 = vtanh.f32 %v370_v42 }
 0x10f   :  { %v435_v56 = vpop.permute.xlu1 %434 }
 0x110   :  { %v1576_v44 = vpop.eup %1575 }
 0x111   :  { %v409_v45 = vpack.c.bf16 %v1574_v43, %v1576_v44  ;;  %v500_v43 = vpop.permute.xlu0 %499 }
 0x113   :  { %1398 = vmatprep.subr.bf16.mxu0 %v409_v45  ;;  %v445_v61 = vpop.permute.xlu1 %444 }
 0x114   :  { %1399 = vmatpush3.bf16.msra.mxu0 %v409_v45  ;;  %v1578_v11 = vpop.eup %1577 }
 0x117   :  { %v455_v60 = vpop.permute.xlu1 %454 }
 0x118   :  { %v1580_v46 = vpop.eup %1579 }
 0x119   :  { %v410_v47 = vpack.c.bf16 %v1580_v46, %v1578_v11 }
 0x11b   :  { %1400 = vmatprep.subr.bf16.mxu0 %v410_v47  ;;  %v465_v3 = vpop.permute.xlu1 %464 }
 0x11c   :  { %1401 = vmatpush3.bf16.msra.mxu0 %v410_v47 }
 0x11f   :  { %1403 = vmatmul.mubr.bf16.vlgmr.msra.gmra.mrb[0].mxu0 %v1526_v21  ;;  %v475_v9 = vpop.permute.xlu1 %474 }
 0x120   :  { %1406 = vmatprep.mubr.bf16.mxu0 %v1527_v22 }
 0x123   :  { %v485_v1 = vpop.permute.xlu1 %484 }
 0x127   :  { %1407 = vmatmul.mubr.bf16.gmra.mrb[4].mxu0 %v1528_v48  ;;  %v495_v38 = vpop.permute.xlu1 %494 }
 0x128   :  { %1410 = vmatprep.mubr.bf16.mxu0 %v1529_v49 }
 0x12b   :  { %v505_v21 = vpop.permute.xlu1 %504 }
 0x12f   :  { %1411 = vmatmul.mubr.bf16.gmra.mrb[8].mxu0 %v1530_v50 }
 0x130   :  { %1414 = vmatprep.mubr.bf16.mxu0 %v1531_v51 }
 0x137   :  { %1415 = vmatmul.mubr.bf16.gmra.mrb[12].mxu0 %v1532_v52 }
 0x1f2   :  { %v1404_v63 = vpop.f32.mrb[0].mxu0 }
 0x1f3   :  { %v598_v0 = vadd.f32 %v1404_v63, %v440_v58  ;;  %v589_v2 = vpop.f32.mrb[1].mxu0 }
 0x1f4   :  { %v590_v4 = vadd.f32 %v589_v2, %v430_v55  ;;  %v1405_v5 = vpop.f32.mrb[2].mxu0 }
 0x1f5   :  { %1581 = vtanh.f32 %v598_v0  ;;  %v601_v7 = vadd.f32 %v1405_v5, %v445_v61  ;;  %v592_v10 = vpop.f32.mrb[3].mxu0  ;;  %v1536_v5 = vld [vmem:[%s2210_s5 + $0x18] sm:$0xff]  }
 0x1f6   :  { %1583 = vtanh.f32 %v590_v4  ;;  %v593_v12 = vadd.f32 %v592_v10, %v435_v56  ;;  %v1535_v4 = vld [vmem:[%s2210_s5 + $0x10] sm:$0xff]   ;;  %v1538_v10 = vld [vmem:[%s2210_s5 + $0x28] sm:$0xff]  }
 0x1f7   :  { %1585 = vtanh.f32 %v601_v7  ;;  %v1537_v7 = vld [vmem:[%s2210_s5 + $0x20] sm:$0xff]  }
 0x1f8   :  { %1587 = vtanh.f32 %v593_v12  ;;  %v1539_v12 = vld [vmem:[%s2210_s5 + $0x30] sm:$0xff]  }
 0x1fa   :  { %v1408_v13 = vpop.f32.mrb[4].mxu0 }
 0x1fb   :  { %v614_v14 = vadd.f32 %v1408_v13, %v460_v62  ;;  %v605_v16 = vpop.f32.mrb[5].mxu0  ;;  %v711_v13 = vpop.permute.xlu0 %710 }
 0x1fc   :  { %v606_v17 = vadd.f32 %v605_v16, %v450_v59  ;;  %v1409_v18 = vpop.f32.mrb[6].mxu0 }
 0x1fd   :  { %1589 = vtanh.f32 %v614_v14  ;;  %v617_v19 = vadd.f32 %v1409_v18, %v465_v3  ;;  %v608_v20 = vpop.f32.mrb[7].mxu0  ;;  %v1534_v3 = vld [vmem:[%s2210_s5 + $0x8] sm:$0xff]   ;;  %v716_v14 = vpop.permute.xlu1 %715 }
 0x1fe   :  { %1591 = vtanh.f32 %v606_v17  ;;  %v609_v24 = vadd.f32 %v608_v20, %v455_v60 }
 0x1ff   :  { %v1582_v25 = vpop.eup %1581  ;;  %1593 = vtanh.f32 %v617_v19  ;;  %v721_v16 = vpop.permute.xlu0 %720 }
 0x200   :  { %v1584_v26 = vpop.eup %1583  ;;  %1595 = vtanh.f32 %v609_v24 }
 0x201   :  { %v1586_v27 = vpop.eup %1585  ;;  %v726_v17 = vpop.permute.xlu1 %725 }
 0x202   :  { %v1588_v28 = vpop.eup %1587  ;;  %v1412_v29 = vpop.f32.mrb[8].mxu0  ;;  %v685_v30 = vpack.c.bf16 %v1586_v27, %v1582_v25 }
 0x203   :  { %v630_v31 = vadd.f32 %v1412_v29, %v480_v23  ;;  %v621_v32 = vpop.f32.mrb[9].mxu0  ;;  %v684_v33 = vpack.c.bf16 %v1588_v28, %v1584_v26  ;;  %v731_v18 = vpop.permute.xlu0 %730 }
 0x204   :  { %v622_v35 = vadd.f32 %v621_v32, %v470_v54  ;;  %v1413_v57 = vpop.f32.mrb[10].mxu0  ;;  %v1540_v54 = vld [vmem:[%s2210_s5 + $0x38] sm:$0xff]  }
 0x205   :  { %1597 = vtanh.f32 %v630_v31  ;;  %v633_v36 = vadd.f32 %v1413_v57, %v485_v1  ;;  %v624_v37 = vpop.f32.mrb[11].mxu0  ;;  %1418 = vmatprep.subr.bf16.mxu1 %v684_v33  ;;  %v736_v19 = vpop.permute.xlu1 %735 }
 0x206   :  { %1599 = vtanh.f32 %v622_v35  ;;  %v625_v6 = vadd.f32 %v624_v37, %v475_v9  ;;  %1419 = vmatpush3.bf16.msra.mxu1 %v684_v33  ;;  %v1541_v9 = vld [vmem:[%s2212_s7] sm:$0xff]  }
 0x207   :  { %v1590_v39 = vpop.eup %1589  ;;  %1601 = vtanh.f32 %v633_v36  ;;  %1420 = vmatprep.subr.bf16.mxu1 %v685_v30  ;;  %1466 = vmatprep.mubr.bf16.mxu0 %v1541_v9  ;;  %v741_v20 = vpop.permute.xlu0 %740 }
 0x208   :  { %v1592_v40 = vpop.eup %1591  ;;  %1603 = vtanh.f32 %v625_v6 }
 0x209   :  { %v1594_v41 = vpop.eup %1593  ;;  %v746_v26 = vpop.permute.xlu1 %745 }
 0x20a   :  { %v1596_v42 = vpop.eup %1595  ;;  %v1416_v44 = vpop.f32.mrb[12].mxu0  ;;  %1421 = vmatpush3.bf16.msra.mxu1 %v685_v30  ;;  %v687_v45 = vpack.c.bf16 %v1594_v41, %v1590_v39 }
 0x20b   :  { %v646_v11 = vadd.f32 %v1416_v44, %v500_v43  ;;  %v637_v46 = vpop.f32.mrb[13].mxu0  ;;  %v686_v47 = vpack.c.bf16 %v1596_v42, %v1592_v40  ;;  %v751_v31 = vpop.permute.xlu0 %750 }
 0x20c   :  { %v638_v22 = vadd.f32 %v637_v46, %v490_v34  ;;  %v1417_v48 = vpop.f32.mrb[14].mxu0 }
 0x20d   :  { %1605 = vtanh.f32 %v646_v11  ;;  %v649_v49 = vadd.f32 %v1417_v48, %v505_v21  ;;  %v640_v50 = vpop.f32.mrb[15].mxu0  ;;  %1422 = vmatprep.subr.bf16.mxu1 %v686_v47  ;;  %v756_v32 = vpop.permute.xlu1 %755 }
 0x20e   :  { %1607 = vtanh.f32 %v638_v22  ;;  %v641_v51 = vadd.f32 %v640_v50, %v495_v38  ;;  %1423 = vmatpush3.bf16.msra.mxu1 %v686_v47 }
 0x20f   :  { %v1598_v52 = vpop.eup %1597  ;;  %1609 = vtanh.f32 %v649_v49  ;;  %1424 = vmatprep.subr.bf16.mxu1 %v687_v45  ;;  %v761_v6 = vpop.permute.xlu0 %760 }
 0x210   :  { %v1600_v53 = vpop.eup %1599  ;;  %1611 = vtanh.f32 %v641_v51 }
 0x211   :  { %v1602_v55 = vpop.eup %1601  ;;  %v766_v42 = vpop.permute.xlu1 %765 }
 0x212   :  { %v1604_v56 = vpop.eup %1603  ;;  %1425 = vmatpush3.bf16.msra.mxu1 %v687_v45  ;;  %v689_v58 = vpack.c.bf16 %v1602_v55, %v1598_v52 }
 0x213   :  { %v688_v61 = vpack.c.bf16 %v1604_v56, %v1600_v53  ;;  %v771_v22 = vpop.permute.xlu0 %770 }
 0x215   :  { %1426 = vmatprep.subr.bf16.mxu1 %v688_v61  ;;  %v776_v52 = vpop.permute.xlu1 %775 }
 0x216   :  { %1427 = vmatpush3.bf16.msra.mxu1 %v688_v61 }
 0x217   :  { %v1606_v59 = vpop.eup %1605  ;;  %1428 = vmatprep.subr.bf16.mxu1 %v689_v58 }
 0x218   :  { %v1608_v60 = vpop.eup %1607 }
 0x219   :  { %v1610_v62 = vpop.eup %1609 }
 0x21a   :  { %v1612_v63 = vpop.eup %1611  ;;  %1429 = vmatpush3.bf16.msra.mxu1 %v689_v58  ;;  %v691_v0 = vpack.c.bf16 %v1610_v62, %v1606_v59  ;;  %v781_v59 = vpop.permute.xlu0 %780 }
 0x21b   :  { %v690_v2 = vpack.c.bf16 %v1612_v63, %v1608_v60 }
 0x21d   :  { %1430 = vmatprep.subr.bf16.mxu1 %v690_v2 }
 0x21e   :  { %1431 = vmatpush3.bf16.msra.mxu1 %v690_v2 }
 0x21f   :  { %1432 = vmatprep.subr.bf16.mxu1 %v691_v0 }
 0x222   :  { %1433 = vmatpush3.bf16.msra.mxu1 %v691_v0 }
 0x225   :  { %1435 = vmatmul.mubr.bf16.vlgmr.msra.gmra.mrb[0].mxu1 %v1534_v3  ;;  %v786_v3 = vpop.permute.xlu1 %785 }
 0x226   :  { %1438 = vmatprep.mubr.bf16.mxu1 %v1535_v4 }
 0x22d   :  { %1439 = vmatmul.mubr.bf16.gmra.mrb[4].mxu1 %v1536_v5 }
 0x22e   :  { %1442 = vmatprep.mubr.bf16.mxu1 %v1537_v7 }
 0x235   :  { %1443 = vmatmul.mubr.bf16.gmra.mrb[8].mxu1 %v1538_v10 }
 0x236   :  { %1446 = vmatprep.mubr.bf16.mxu1 %v1539_v12 }
 0x23d   :  { %1447 = vmatmul.mubr.bf16.gmra.mrb[12].mxu1 %v1540_v54 }
 0x2f8   :  { %v1436_v23 = vpop.f32.mrb[0].mxu1 }
 0x2f9   :  { %v879_v24 = vadd.f32 %v1436_v23, %v721_v16  ;;  %v870_v25 = vpop.f32.mrb[1].mxu1 }
 0x2fa   :  { %v871_v1 = vadd.f32 %v870_v25, %v711_v13  ;;  %v1437_v27 = vpop.f32.mrb[2].mxu1 }
 0x2fb   :  { %1613 = vtanh.f32 %v879_v24  ;;  %v882_v28 = vadd.f32 %v1437_v27, %v726_v17  ;;  %v873_v29 = vpop.f32.mrb[3].mxu1  ;;  %v1544_v27 = vld [vmem:[%s2212_s7 + $0x18] sm:$0xff]  }
 0x2fc   :  { %1615 = vtanh.f32 %v871_v1  ;;  %v874_v30 = vadd.f32 %v873_v29, %v716_v14  ;;  %v1543_v1 = vld [vmem:[%s2212_s7 + $0x10] sm:$0xff]   ;;  %v1546_v29 = vld [vmem:[%s2212_s7 + $0x28] sm:$0xff]  }
 0x2fd   :  { %1617 = vtanh.f32 %v882_v28  ;;  %v1545_v28 = vld [vmem:[%s2212_s7 + $0x20] sm:$0xff]  }
 0x2fe   :  { %1619 = vtanh.f32 %v874_v30  ;;  %v1547_v30 = vld [vmem:[%s2212_s7 + $0x30] sm:$0xff]  }
 0x300   :  { %v1440_v33 = vpop.f32.mrb[4].mxu1 }
 0x301   :  { %v895_v34 = vadd.f32 %v1440_v33, %v741_v20  ;;  %v886_v35 = vpop.f32.mrb[5].mxu1  ;;  %v992_v33 = vpop.permute.xlu0 %991 }
 0x302   :  { %v887_v57 = vadd.f32 %v886_v35, %v731_v18  ;;  %v1441_v36 = vpop.f32.mrb[6].mxu1 }
 0x303   :  { %1621 = vtanh.f32 %v895_v34  ;;  %v898_v37 = vadd.f32 %v1441_v36, %v746_v26  ;;  %v889_v38 = vpop.f32.mrb[7].mxu1  ;;  %v1542_v26 = vld [vmem:[%s2212_s7 + $0x8] sm:$0xff]   ;;  %v997_v34 = vpop.permute.xlu1 %996 }
 0x304   :  { %1623 = vtanh.f32 %v887_v57  ;;  %v890_v39 = vadd.f32 %v889_v38, %v736_v19 }
 0x305   :  { %v1614_v40 = vpop.eup %1613  ;;  %1625 = vtanh.f32 %v898_v37  ;;  %v1002_v35 = vpop.permute.xlu0 %1001 }
 0x306   :  { %v1616_v41 = vpop.eup %1615  ;;  %1627 = vtanh.f32 %v890_v39 }
 0x307   :  { %v1618_v43 = vpop.eup %1617  ;;  %v1007_v57 = vpop.permute.xlu1 %1006 }
 0x308   :  { %v1620_v44 = vpop.eup %1619  ;;  %v1444_v45 = vpop.f32.mrb[8].mxu1  ;;  %v966_v11 = vpack.c.bf16 %v1618_v43, %v1614_v40 }
 0x309   :  { %v911_v46 = vadd.f32 %v1444_v45, %v761_v6  ;;  %v902_v47 = vpop.f32.mrb[9].mxu1  ;;  %v965_v21 = vpack.c.bf16 %v1620_v44, %v1616_v41  ;;  %v1012_v36 = vpop.permute.xlu0 %1011 }
 0x30a   :  { %v903_v48 = vadd.f32 %v902_v47, %v751_v31  ;;  %v1445_v49 = vpop.f32.mrb[10].mxu1  ;;  %v1548_v31 = vld [vmem:[%s2212_s7 + $0x38] sm:$0xff]  }
 0x30b   :  { %1629 = vtanh.f32 %v911_v46  ;;  %v914_v50 = vadd.f32 %v1445_v49, %v766_v42  ;;  %v905_v51 = vpop.f32.mrb[11].mxu1  ;;  %1450 = vmatprep.subr.bf16.mxu0 %v965_v21  ;;  %v1017_v37 = vpop.permute.xlu1 %1016 }
 0x30c   :  { %1631 = vtanh.f32 %v903_v48  ;;  %v906_v53 = vadd.f32 %v905_v51, %v756_v32  ;;  %1451 = vmatpush3.bf16.msra.mxu0 %v965_v21  ;;  %v1703_v32 = vmov 0.0  }
 0x30d   :  { %v1622_v55 = vpop.eup %1621  ;;  %1633 = vtanh.f32 %v914_v50  ;;  %1452 = vmatprep.subr.bf16.mxu0 %v966_v11  ;;  %1482 = vmatprep.subr.bf16.mxu1 %v1703_v32  ;;  %v1022_v38 = vpop.permute.xlu0 %1021 }
 0x30e   :  { %v1624_v56 = vpop.eup %1623  ;;  %1635 = vtanh.f32 %v906_v53  ;;  %1498 = vmatprep.mubr.msk.bf16.mxu1 %vm1704_vm0, %v1703_v32 }
 0x30f   :  { %v1626_v58 = vpop.eup %1625  ;;  %v1027_v41 = vpop.permute.xlu1 %1026 }
 0x310   :  { %v1628_v61 = vpop.eup %1627  ;;  %v1448_v60 = vpop.f32.mrb[12].mxu1  ;;  %1453 = vmatpush3.bf16.msra.mxu0 %v966_v11  ;;  %v968_v62 = vpack.c.bf16 %v1626_v58, %v1622_v55 }
 0x311   :  { %v927_v63 = vadd.f32 %v1448_v60, %v781_v59  ;;  %v918_v0 = vpop.f32.mrb[13].mxu1  ;;  %v967_v2 = vpack.c.bf16 %v1628_v61, %v1624_v56  ;;  %v1032_v46 = vpop.permute.xlu0 %1031 }
 0x312   :  { %v919_v4 = vadd.f32 %v918_v0, %v771_v22  ;;  %v1449_v5 = vpop.f32.mrb[14].mxu1 }
 0x313   :  { %1637 = vtanh.f32 %v927_v63  ;;  %v930_v7 = vadd.f32 %v1449_v5, %v786_v3  ;;  %v921_v10 = vpop.f32.mrb[15].mxu1  ;;  %1454 = vmatprep.subr.bf16.mxu0 %v967_v2  ;;  %v1037_v47 = vpop.permute.xlu1 %1036 }
 0x314   :  { %1639 = vtanh.f32 %v919_v4  ;;  %v922_v12 = vadd.f32 %v921_v10, %v776_v52  ;;  %1455 = vmatpush3.bf16.msra.mxu0 %v967_v2 }
 0x315   :  { %v1630_v54 = vpop.eup %1629  ;;  %1641 = vtanh.f32 %v930_v7  ;;  %1456 = vmatprep.subr.bf16.mxu0 %v968_v62  ;;  %v1042_v53 = vpop.permute.xlu0 %1041 }
 0x316   :  { %v1632_v9 = vpop.eup %1631  ;;  %1643 = vtanh.f32 %v922_v12 }
 0x317   :  { %v1634_v13 = vpop.eup %1633  ;;  %v1047_v61 = vpop.permute.xlu1 %1046 }
 0x318   :  { %v1636_v14 = vpop.eup %1635  ;;  %1457 = vmatpush3.bf16.msra.mxu0 %v968_v62  ;;  %v970_v16 = vpack.c.bf16 %v1634_v13, %v1630_v54 }
 0x319   :  { %v969_v17 = vpack.c.bf16 %v1636_v14, %v1632_v9  ;;  %v1052_v4 = vpop.permute.xlu0 %1051 }
 0x31b   :  { %1458 = vmatprep.subr.bf16.mxu0 %v969_v17  ;;  %v1057_v54 = vpop.permute.xlu1 %1056 }
 0x31c   :  { %1459 = vmatpush3.bf16.msra.mxu0 %v969_v17 }
 0x31d   :  { %v1638_v18 = vpop.eup %1637  ;;  %1460 = vmatprep.subr.bf16.mxu0 %v970_v16 }
 0x31e   :  { %v1640_v19 = vpop.eup %1639 }
 0x31f   :  { %v1642_v20 = vpop.eup %1641 }
 0x320   :  { %v1644_v23 = vpop.eup %1643  ;;  %1461 = vmatpush3.bf16.msra.mxu0 %v970_v16  ;;  %v972_v24 = vpack.c.bf16 %v1642_v20, %v1638_v18  ;;  %v1062_v18 = vpop.permute.xlu0 %1061 }
 0x321   :  { %v971_v25 = vpack.c.bf16 %v1644_v23, %v1640_v19 }
 0x323   :  { %1462 = vmatprep.subr.bf16.mxu0 %v971_v25 }
 0x324   :  { %1463 = vmatpush3.bf16.msra.mxu0 %v971_v25 }
 0x325   :  { %1464 = vmatprep.subr.bf16.mxu0 %v972_v24 }
 0x328   :  { %1465 = vmatpush3.bf16.msra.mxu0 %v972_v24 }
 0x32b   :  { %1467 = vmatmul.mubr.bf16.vlgmr.msra.gmra.mrb[16].mxu0 %v1542_v26  ;;  %v1067_v26 = vpop.permute.xlu1 %1066 }
 0x32c   :  { %1470 = vmatprep.mubr.bf16.mxu0 %v1543_v1 }
 0x333   :  { %1471 = vmatmul.mubr.bf16.gmra.mrb[20].mxu0 %v1544_v27 }
 0x334   :  { %1474 = vmatprep.mubr.bf16.mxu0 %v1545_v28 }
 0x33b   :  { %1475 = vmatmul.mubr.bf16.gmra.mrb[24].mxu0 %v1546_v29 }
 0x33c   :  { %1478 = vmatprep.mubr.bf16.mxu0 %v1547_v30 }
 0x343   :  { %1479 = vmatmul.mubr.bf16.gmra.mrb[28].mxu0 %v1548_v31 }
 0x3fe   :  { %v1468_v6 = vpop.f32.mrb[16].mxu0 }
 0x3ff   :  { %v1160_v39 = vadd.f32 %v1468_v6, %v1002_v35  ;;  %v1151_v40 = vpop.f32.mrb[17].mxu0 }
 0x400   :  { %v1152_v42 = vadd.f32 %v1151_v40, %v992_v33  ;;  %v1469_v43 = vpop.f32.mrb[18].mxu0 }
 0x401   :  { %1645 = vtanh.f32 %v1160_v39  ;;  %v1163_v44 = vadd.f32 %v1469_v43, %v1007_v57  ;;  %v1154_v45 = vpop.f32.mrb[19].mxu0  ;;  %v1283_v43 = vpop.permute.xlu0 %1282 }
 0x402   :  { %1647 = vtanh.f32 %v1152_v42  ;;  %v1155_v11 = vadd.f32 %v1154_v45, %v997_v34  ;;  %v1230_v42 = vld [vmem:[%s2214_s9] sm:$0xf] }
 0x403   :  { %1649 = vtanh.f32 %v1163_v44  ;;  %v1288_v44 = vrot.slane %v1283_v43, %v141_v15 }
 0x404   :  { %1651 = vtanh.f32 %v1155_v11 }
 0x406   :  { %v1472_v21 = vpop.f32.mrb[20].mxu0 }
 0x407   :  { %v1176_v22 = vadd.f32 %v1472_v21, %v1022_v38  ;;  %v1167_v48 = vpop.f32.mrb[21].mxu0 }
 0x408   :  { %v1168_v49 = vadd.f32 %v1167_v48, %v1012_v36  ;;  %v1473_v50 = vpop.f32.mrb[22].mxu0 }
 0x409   :  { %1653 = vtanh.f32 %v1176_v22  ;;  %v1179_v51 = vadd.f32 %v1473_v50, %v1027_v41  ;;  %v1170_v52 = vpop.f32.mrb[23].mxu0 }
 0x40a   :  { %1655 = vtanh.f32 %v1168_v49  ;;  %v1171_v55 = vadd.f32 %v1170_v52, %v1017_v37 }
 0x40b   :  { %v1646_v56 = vpop.eup %1645  ;;  %1657 = vtanh.f32 %v1179_v51 }
 0x40c   :  { %v1648_v58 = vpop.eup %1647  ;;  %1659 = vtanh.f32 %v1171_v55 }
 0x40d   :  { %v1650_v59 = vpop.eup %1649 }
 0x40e   :  { %v1652_v60 = vpop.eup %1651  ;;  %v1476_v62 = vpop.f32.mrb[24].mxu0  ;;  %v1232_v63 = vpack.c.bf16 %v1650_v59, %v1646_v56 }
 0x40f   :  { %v1192_v0 = vadd.f32 %v1476_v62, %v1042_v53  ;;  %v1183_v2 = vpop.f32.mrb[25].mxu0  ;;  %v1231_v3 = vpack.c.bf16 %v1652_v60, %v1648_v58 }
 0x410   :  { %v1184_v5 = vadd.f32 %v1183_v2, %v1032_v46  ;;  %v1477_v7 = vpop.f32.mrb[26].mxu0 }
 0x411   :  { %1661 = vtanh.f32 %v1192_v0  ;;  %v1195_v10 = vadd.f32 %v1477_v7, %v1047_v61  ;;  %v1186_v12 = vpop.f32.mrb[27].mxu0  ;;  %1483 = vmatpush3.bf16.msra.mxu1 %v1231_v3 }
 0x412   :  { %1663 = vtanh.f32 %v1184_v5  ;;  %v1187_v9 = vadd.f32 %v1186_v12, %v1037_v47  ;;  %1484 = vmatprep.subr.bf16.mxu1 %v1703_v32 }
 0x413   :  { %v1654_v13 = vpop.eup %1653  ;;  %1665 = vtanh.f32 %v1195_v10 }
 0x414   :  { %v1656_v14 = vpop.eup %1655  ;;  %1667 = vtanh.f32 %v1187_v9 }
 0x415   :  { %v1658_v16 = vpop.eup %1657  ;;  %1485 = vmatpush3.bf16.msra.mxu1 %v1232_v63 }
 0x416   :  { %v1660_v17 = vpop.eup %1659  ;;  %v1480_v19 = vpop.f32.mrb[28].mxu0  ;;  %1486 = vmatprep.subr.bf16.mxu1 %v1703_v32  ;;  %v1234_v20 = vpack.c.bf16 %v1658_v16, %v1654_v13 }
 0x417   :  { %v1208_v23 = vadd.f32 %v1480_v19, %v1062_v18  ;;  %v1199_v24 = vpop.f32.mrb[29].mxu0  ;;  %v1233_v25 = vpack.c.bf16 %v1660_v17, %v1656_v14 }
 0x418   :  { %v1200_v1 = vadd.f32 %v1199_v24, %v1052_v4  ;;  %v1481_v27 = vpop.f32.mrb[30].mxu0 }
 0x419   :  { %1669 = vtanh.f32 %v1208_v23  ;;  %v1211_v28 = vadd.f32 %v1481_v27, %v1067_v26  ;;  %v1202_v29 = vpop.f32.mrb[31].mxu0  ;;  %1487 = vmatpush3.bf16.msra.mxu1 %v1233_v25 }
 0x41a   :  { %1671 = vtanh.f32 %v1200_v1  ;;  %v1203_v30 = vadd.f32 %v1202_v29, %v1057_v54  ;;  %1488 = vmatprep.subr.bf16.mxu1 %v1703_v32 }
 0x41b   :  { %v1662_v31 = vpop.eup %1661  ;;  %1673 = vtanh.f32 %v1211_v28 }
 0x41c   :  { %v1664_v33 = vpop.eup %1663  ;;  %1675 = vtanh.f32 %v1203_v30 }
 0x41d   :  { %v1666_v34 = vpop.eup %1665  ;;  %1489 = vmatpush3.bf16.msra.mxu1 %v1234_v20 }
 0x41e   :  { %v1668_v35 = vpop.eup %1667  ;;  %1490 = vmatprep.subr.bf16.mxu1 %v1703_v32  ;;  %v1236_v57 = vpack.c.bf16 %v1666_v34, %v1662_v31 }
 0x41f   :  { %v1235_v36 = vpack.c.bf16 %v1668_v35, %v1664_v33 }
 0x421   :  { %1491 = vmatpush3.bf16.msra.mxu1 %v1235_v36 }
 0x422   :  { %1492 = vmatprep.subr.bf16.mxu1 %v1703_v32 }
 0x423   :  { %v1670_v37 = vpop.eup %1669 }
 0x424   :  { %v1672_v38 = vpop.eup %1671 }
 0x425   :  { %v1674_v6 = vpop.eup %1673  ;;  %1493 = vmatpush3.bf16.msra.mxu1 %v1236_v57 }
 0x426   :  { %v1676_v39 = vpop.eup %1675  ;;  %1494 = vmatprep.subr.bf16.mxu1 %v1703_v32  ;;  %v1238_v40 = vpack.c.bf16 %v1674_v6, %v1670_v37 }
 0x427   :  { %v1237_v41 = vpack.c.bf16 %v1676_v39, %v1672_v38 }
 0x429   :  { %1495 = vmatpush3.bf16.msra.mxu1 %v1237_v41 }
 0x42a   :  { %1496 = vmatprep.subr.bf16.mxu1 %v1703_v32 }
 0x42d   :  { %1497 = vmatpush3.bf16.msra.mxu1 %v1238_v40 }
 0x430   :  { %1499 = vmatmul.mubr.bf16.vlgmr.msra.gmra.mrb[16].mxu1 %v1230_v42 }
 0x503   :  { %v1273_v45 = vpop.f32.mrb[16].mxu1 }
 0x504   :  { %v1289_v11 = vadd.f32 %v1288_v44, %v1273_v45  ;;  %v1500_v46 = vpop.f32.mrb[17].mxu1 }
 0x505   :  { %v1276_v47 = vpop.f32.mrb[18].mxu1 }
 0x506   :  { %1290 = vst [vmem:[#allocation3] sm:$0x1] %v1289_v11  ;;  %v1501_v21 = vpop.f32.mrb[19].mxu1 }
 0x507   :  { %1688 = shalt.err (!%p1685_p4)
}
 0x508   :  { %s1689_s1 = scalar_lea.hbm %s2216_s11, 16 }
 0x509   :  { %p1690_p5 = scmp.ne.s32.totalorder %s2216_s11, %s1689_s1  ;;  %p1693_p6 = scmp.lt.u32.totalorder %s1689_s1, %s2216_s11 }
 0x50b   :  { %p1695_p7 = pnand %p1693_p6, %p1690_p5 }
 0x50d   :  { %1698 = shalt.err (!%p1695_p7)
}
 0x50e   :  { %1300 = dma.vmem_to_hbm [thread:$0]  %s1298_s25, 16, %s2216_s11, [#allocation4]  }
 0x50f   :  { %1699 = dma.done.wait [#allocation4], 16  }
 0x510   :  { %1700 = vsyncadd [#allocation4], 4294967280 }
 0x511   :  { %1304 = vsyncpa [#allocation4], 1 }

</bundles_post_ra>
